<compile_context>
chip_gen: v7x
topology: tpu7x:2x2x1
jax: 0.10.0
libtpu: 0.0.40
codegen_flags: <defaults>
</compile_context>

<pallas_src>
import numpy as np
import jax
import jax.numpy as jnp
from jax.experimental import pallas as pl
from jax.experimental.pallas import tpu as pltpu

BN_EPS = 1e-5


# ----------------------------------------------------------------------------
# Constant construction (runs ONCE, outside the per-step jit)
# ----------------------------------------------------------------------------
def _interp_matrix(n_in, n_out):
    """A[p, h] such that out[p] = sum_h A[p, h] * in[h] (align_corners=True)."""
    A = np.zeros((n_out, n_in), np.float32)
    if n_out == 1 or n_in == 1:
        A[:, 0] = 1.0
        return A
    src = np.arange(n_out, dtype=np.float64) * (n_in - 1) / (n_out - 1)
    i0 = np.clip(np.floor(src).astype(np.int64), 0, n_in - 1)
    i1 = np.clip(i0 + 1, 0, n_in - 1)
    f = (src - i0).astype(np.float32)
    A[np.arange(n_out), i0] += (1.0 - f)
    A[np.arange(n_out), i1] += f
    return A


def build_constants(params, N, Ci, Co, H, W):
    """Builds all shape/weight-dependent constant matrices (numpy, host-side).

    Called once per weight update -- NOT inside the per-step jit, so the hot
    path contains no einsum/tile/transpose auxiliary XLA ops beyond the two
    tiny NCHW relayouts at the interface.
    """
    Ho, Wo = 2 * H, 2 * W
    Ah = _interp_matrix(H, Ho)        # (Ho, H)
    Aw = _interp_matrix(W, Wo)        # (Wo, W)

    # Width interp + channels-last lane packing, NO pad columns:
    #   t[(n,h), x*Ci + ci] = sum_w x[n, ci, h, w] * Aw[x, w]
    AW = np.zeros((Ci * W, Wo * Ci), np.float32)
    for ci in range(Ci):
        AW[ci * W:(ci + 1) * W, ci::Ci] = Aw.T

    # Height interp rows per conv row-tap dy, conv zero-padding folded in:
    #   AH3[dy] = Ahp[dy : dy + Ho], Ahp has one zero row top & bottom.
    Ahp = np.zeros((Ho + 2, H), np.float32)
    Ahp[1:-1] = Ah
    AH3 = np.stack([Ahp[dy:dy + Ho] for dy in range(3)], axis=0)   # (3, Ho, H)

    # Banded (block-Toeplitz) conv matrices per dy, pad taps omitted (the
    # corresponding t columns no longer exist, and they were identically zero):
    #   M3[dy][q*Ci + ci, x*Co + co] = sum_dx [q == x + dx - 1] * w[dy,dx,ci,co]
    w = np.asarray(params["w"], np.float32)          # (3, 3, Ci, Co)  HWIO
    P = np.zeros((3, Wo, Wo), np.float32)
    for dx in range(3):
        xs = np.arange(Wo)
        qs = xs + dx - 1
        ok = (qs >= 0) & (qs < Wo)
        P[dx, qs[ok], xs[ok]] = 1.0
    M3 = [np.einsum("dqx,dio->qixo", P, w[dy]).reshape(Wo * Ci, Wo * Co)
          for dy in range(3)]
    M3cat = np.concatenate(M3, axis=1)               # (Wo*Ci, 3*Wo*Co)

    # Conv bias tiled onto the (x, co) lane packing.
    b = np.asarray(params["b"], np.float32).reshape(1, Co)
    bias_row = np.tile(b, (1, Wo))                    # (1, Wo*Co)

    # BatchNorm per-channel fold / broadcast matrices over the (x, co) lanes.
    G = np.tile(np.eye(Co, dtype=np.float32), (Wo, 1))   # (Wo*Co, Co)
    GT = G.T.copy()                                       # (Co, Wo*Co)

    return {
        "AW": jnp.asarray(AW, jnp.bfloat16),
        "M3cat": jnp.asarray(M3cat, jnp.bfloat16),
        "AH3": jnp.asarray(AH3, jnp.bfloat16),
        "bias_row": jnp.asarray(bias_row, jnp.float32),
        "G": jnp.asarray(G, jnp.float32),
        "GT": jnp.asarray(GT, jnp.float32),
        "gamma": jnp.asarray(params["gamma"], jnp.float32),
        "beta": jnp.asarray(params["beta"], jnp.float32),
        "alpha": jnp.asarray(params["alpha"], jnp.float32),
    }


# ----------------------------------------------------------------------------
# Single fused kernel: upsample + pad + 3x3 conv + BatchNorm2d + PReLU
# ----------------------------------------------------------------------------
def fused_kernel(x_ref, aw_ref, m3_ref, ah3_ref, bias_ref, g_ref, gt_ref,
                 gamma_ref, beta_ref, alpha_ref, o_ref, acc_ref):
    f32 = jnp.float32
    bf16 = jnp.bfloat16
    rows, cols = o_ref.shape                 # (N*Ho, Wo*Co)
    _, Ho, H = ah3_ref.shape
    n_img = rows // Ho
    co = gamma_ref.shape[1]
    inv_count = 1.0 / (rows * (cols // co))  # 1 / (N*Ho*Wo)

    # (1) Width upsample + channels-last packing. bf16 x bf16 -> f32 acc.
    t = jnp.dot(x_ref[...], aw_ref[...], preferred_element_type=f32)   # (N*H, Wo*Ci)

    # (2) 3x3 conv width/channel contraction for all 3 row taps in ONE matmul
    #     (K = Wo*Ci = 128 exactly; output columns = [dy0 | dy1 | dy2] blocks).
    c = jnp.dot(t.astype(bf16), m3_ref[...], preferred_element_type=f32)  # (N*H, 3*cols)
    cb = c.astype(bf16)

    # (3) Height upsample + per-tap (dy) shift + tap sum, per image.
    #     Static slices: rows at multiples of H (sublane-aligned), columns at
    #     multiples of cols (lane-aligned) -> pure views, no VMEM copies.
    bias = bias_ref[...]                                   # (1, cols)
    for n in range(n_img):
        r0 = n * H
        a_n = jnp.dot(ah3_ref[0], cb[r0:r0 + H, 0:cols],
                      preferred_element_type=f32)          # (Ho, cols)
        a_n = a_n + jnp.dot(ah3_ref[1], cb[r0:r0 + H, cols:2 * cols],
                            preferred_element_type=f32)
        a_n = a_n + jnp.dot(ah3_ref[2], cb[r0:r0 + H, 2 * cols:3 * cols],
                            preferred_element_type=f32)
        acc_ref[n * Ho:(n + 1) * Ho, :] = a_n + bias

    acc = acc_ref[...]                                     # (rows, cols) f32

    # (4) BatchNorm2d, training-mode batch statistics, two-pass in f32
    #     (subtract-mean form; per-channel fold via constant 0/1 matrices so
    #     there are no in-kernel lane reshapes).
    rs = jnp.sum(acc, axis=0, keepdims=True)                                  # (1, cols)
    mean_c = jnp.dot(rs, g_ref[...], preferred_element_type=f32) * inv_count  # (1, co)
    mean_row = jnp.dot(mean_c, gt_ref[...], preferred_element_type=f32)       # (1, cols)
    d = acc - mean_row
    ss = jnp.sum(d * d, axis=0, keepdims=True)                                # (1, cols)
    var_c = jnp.dot(ss, g_ref[...], preferred_element_type=f32) * inv_count   # (1, co)
    scale_c = gamma_ref[...] * jax.lax.rsqrt(var_c + BN_EPS)                  # (1, co)
    scale_row = jnp.dot(scale_c, gt_ref[...], preferred_element_type=f32)     # (1, cols)
    beta_row = jnp.dot(beta_ref[...], gt_ref[...], preferred_element_type=f32)
    y = d * scale_row + beta_row

    # (5) PReLU (single shared parameter, PyTorch default).
    a = alpha_ref[...]                                     # (1, 1), broadcasts
    o_ref[...] = jnp.where(y >= 0.0, y, a * y).astype(o_ref.dtype)


# ----------------------------------------------------------------------------
# Per-step wrapper (hot path): relayout in -> one pallas_call -> relayout out
# ----------------------------------------------------------------------------
@jax.jit
def upsample_forward(x_nchw, consts):
    N, Ci, H, W = x_nchw.shape
    Ho, Wo = 2 * H, 2 * W
    Co = consts["gamma"].shape[1]

    # rows = (n, h), lanes = (ci, w); cast to bf16 for single-pass MXU operands.
    x2 = jnp.transpose(x_nchw, (0, 2, 1, 3)).reshape(N * H, Ci * W).astype(jnp.bfloat16)

    vmem = pl.BlockSpec(memory_space=pltpu.MemorySpace.VMEM)
    out2d = pl.pallas_call(
        fused_kernel,
        out_shape=jax.ShapeDtypeStruct((N * Ho, Wo * Co), jnp.float32),
        in_specs=[vmem] * 10,
        out_specs=vmem,
        scratch_shapes=[pltpu.VMEM((N * Ho, Wo * Co), jnp.float32)],
    )(x2, consts["AW"], consts["M3cat"], consts["AH3"], consts["bias_row"],
      consts["G"], consts["GT"], consts["gamma"], consts["beta"], consts["alpha"])

    # Cheap relayout back to PyTorch NCHW (kernel output stays lane-dense).
    return jnp.transpose(out2d.reshape(N, Ho, Wo, Co), (0, 3, 1, 2))


# ----------------------------------------------------------------------------
# Pure-JAX f32 reference (same math, no Pallas) for a sanity check
# ----------------------------------------------------------------------------
def reference_forward(x_nchw, params):
    N, Ci, H, W = x_nchw.shape
    Co = params["w"].shape[-1]
    Ho, Wo = 2 * H, 2 * W
    Ah = jnp.asarray(_interp_matrix(H, Ho))
    Aw = jnp.asarray(_interp_matrix(W, Wo))
    up = jnp.einsum("ph,nchw->ncpw", Ah, x_nchw)
    up = jnp.einsum("qw,ncpw->ncpq", Aw, up)
    w_oihw = jnp.transpose(params["w"], (3, 2, 0, 1))
    out = jax.lax.conv_general_dilated(
        up, w_oihw, window_strides=(1, 1), padding=((1, 1), (1, 1)),
        dimension_numbers=("NCHW", "OIHW", "NCHW"),
        precision=jax.lax.Precision.HIGHEST)
    out = out + params["b"].reshape(1, Co, 1, 1)
    mean = jnp.mean(out, axis=(0, 2, 3), keepdims=True)
    var = jnp.mean((out - mean) ** 2, axis=(0, 2, 3), keepdims=True)
    y = (out - mean) / jnp.sqrt(var + BN_EPS)
    y = y * params["gamma"].reshape(1, Co, 1, 1) + params["beta"].reshape(1, Co, 1, 1)
    a = params["alpha"][0, 0]
    return jnp.where(y >= 0, y, a * y)


if __name__ == "__main__":
    N, Ci, Co, H, W = 2, 4, 8, 16, 16

    key = jax.random.PRNGKey(0)
    kx, kw, kb, kg, kbt = jax.random.split(key, 5)
    x = jax.random.normal(kx, (N, Ci, H, W), jnp.float32)
    params = {
        "w": 0.1 * jax.random.normal(kw, (3, 3, Ci, Co), jnp.float32),   # HWIO
        "b": 0.1 * jax.random.normal(kb, (1, Co), jnp.float32),
        "gamma": 1.0 + 0.1 * jax.random.normal(kg, (1, Co), jnp.float32),
        "beta": 0.1 * jax.random.normal(kbt, (1, Co), jnp.float32),
        "alpha": jnp.full((1, 1), 0.25, jnp.float32),                    # PReLU default
    }

    # Built once per weight update, outside the per-step hot path.
    consts = build_constants(params, N, Ci, Co, H, W)

    out = jax.block_until_ready(upsample_forward(x, consts))
    assert out.shape == (N, Co, 2 * H, 2 * W), out.shape
    assert bool(jnp.all(jnp.isfinite(out)))

    ref = jax.block_until_ready(reference_forward(x, params))
    # Tolerance accounts for bf16 MXU operands (f32 reference): interp/conv
    # coefficients lose ~3 decimal digits; structural bugs would show as O(1).
    assert bool(jnp.allclose(out, ref, rtol=3e-2, atol=3e-2)), \
        float(jnp.max(jnp.abs(out - ref)))

    print("KERNEL_OK")
</pallas_src>

<mosaic_0001>
module attributes {stable_mosaic.version = 11 : i64} {
  func.func @fused_kernel(%arg0: memref<32x64xbf16, #tpu.memory_space<vmem>>, %arg1: memref<64x128xbf16, #tpu.memory_space<vmem>>, %arg2: memref<128x768xbf16, #tpu.memory_space<vmem>>, %arg3: memref<3x32x16xbf16, #tpu.memory_space<vmem>>, %arg4: memref<1x256xf32, #tpu.memory_space<vmem>>, %arg5: memref<256x8xf32, #tpu.memory_space<vmem>>, %arg6: memref<8x256xf32, #tpu.memory_space<vmem>>, %arg7: memref<1x8xf32, #tpu.memory_space<vmem>>, %arg8: memref<1x8xf32, #tpu.memory_space<vmem>>, %arg9: memref<1x1xf32, #tpu.memory_space<vmem>>, %arg10: memref<64x256xf32, #tpu.memory_space<vmem>>, %arg11: memref<64x256xf32, #tpu.memory_space<vmem>>) attributes {dimension_semantics = [], scalar_prefetch = 0 : i64, scratch_operands = 1 : i64, tpu.core_type = #tpu.core_type<tc>} {
    %c0 = arith.constant 0 : index
    %c0_0 = arith.constant 0 : index
    %0 = vector.load %arg0[%c0, %c0_0] : memref<32x64xbf16, #tpu.memory_space<vmem>>, vector<32x64xbf16>
    %c0_1 = arith.constant 0 : index
    %c0_2 = arith.constant 0 : index
    %1 = vector.load %arg1[%c0_1, %c0_2] : memref<64x128xbf16, #tpu.memory_space<vmem>>, vector<64x128xbf16>
    %cst = arith.constant dense<0.000000e+00> : vector<32x128xf32>
    %2 = tpu.matmul %0, %1, %cst {dimension_numbers = #tpu.dot_dimension_numbers<[1], [0], [0], [1], [0, 0, 1, 1], [], []>} : vector<32x64xbf16>, vector<64x128xbf16>, vector<32x128xf32> -> vector<32x128xf32>
    %3 = arith.truncf %2 : vector<32x128xf32> to vector<32x128xbf16>
    %c0_3 = arith.constant 0 : index
    %c0_4 = arith.constant 0 : index
    %4 = vector.load %arg2[%c0_3, %c0_4] : memref<128x768xbf16, #tpu.memory_space<vmem>>, vector<128x768xbf16>
    %cst_5 = arith.constant dense<0.000000e+00> : vector<32x768xf32>
    %5 = tpu.matmul %3, %4, %cst_5 {dimension_numbers = #tpu.dot_dimension_numbers<[1], [0], [0], [1], [0, 0, 1, 1], [], []>} : vector<32x128xbf16>, vector<128x768xbf16>, vector<32x768xf32> -> vector<32x768xf32>
    %6 = arith.truncf %5 : vector<32x768xf32> to vector<32x768xbf16>
    %c0_6 = arith.constant 0 : index
    %c0_7 = arith.constant 0 : index
    %7 = vector.load %arg4[%c0_6, %c0_7] : memref<1x256xf32, #tpu.memory_space<vmem>>, vector<1x256xf32>
    %c0_8 = arith.constant 0 : index
    %c0_9 = arith.constant 0 : index
    %c0_10 = arith.constant 0 : index
    %8 = vector.load %arg3[%c0_8, %c0_9, %c0_10] : memref<3x32x16xbf16, #tpu.memory_space<vmem>>, vector<1x32x16xbf16>
    %9 = vector.shape_cast %8 : vector<1x32x16xbf16> to vector<32x16xbf16>
    %10 = vector.extract_strided_slice %6 {offsets = [0, 0], sizes = [16, 256], strides = [1, 1]} : vector<32x768xbf16> to vector<16x256xbf16>
    %cst_11 = arith.constant dense<0.000000e+00> : vector<32x256xf32>
    %11 = tpu.matmul %9, %10, %cst_11 {dimension_numbers = #tpu.dot_dimension_numbers<[1], [0], [0], [1], [0, 0, 1, 1], [], []>} : vector<32x16xbf16>, vector<16x256xbf16>, vector<32x256xf32> -> vector<32x256xf32>
    %c1 = arith.constant 1 : index
    %c0_12 = arith.constant 0 : index
    %c0_13 = arith.constant 0 : index
    %12 = vector.load %arg3[%c1, %c0_12, %c0_13] : memref<3x32x16xbf16, #tpu.memory_space<vmem>>, vector<1x32x16xbf16>
    %13 = vector.shape_cast %12 : vector<1x32x16xbf16> to vector<32x16xbf16>
    %14 = vector.extract_strided_slice %6 {offsets = [0, 256], sizes = [16, 256], strides = [1, 1]} : vector<32x768xbf16> to vector<16x256xbf16>
    %cst_14 = arith.constant dense<0.000000e+00> : vector<32x256xf32>
    %15 = tpu.matmul %13, %14, %cst_14 {dimension_numbers = #tpu.dot_dimension_numbers<[1], [0], [0], [1], [0, 0, 1, 1], [], []>} : vector<32x16xbf16>, vector<16x256xbf16>, vector<32x256xf32> -> vector<32x256xf32>
    %16 = arith.addf %11, %15 : vector<32x256xf32>
    %c2 = arith.constant 2 : index
    %c0_15 = arith.constant 0 : index
    %c0_16 = arith.constant 0 : index
    %17 = vector.load %arg3[%c2, %c0_15, %c0_16] : memref<3x32x16xbf16, #tpu.memory_space<vmem>>, vector<1x32x16xbf16>
    %18 = vector.shape_cast %17 : vector<1x32x16xbf16> to vector<32x16xbf16>
    %19 = vector.extract_strided_slice %6 {offsets = [0, 512], sizes = [16, 256], strides = [1, 1]} : vector<32x768xbf16> to vector<16x256xbf16>
    %cst_17 = arith.constant dense<0.000000e+00> : vector<32x256xf32>
    %20 = tpu.matmul %18, %19, %cst_17 {dimension_numbers = #tpu.dot_dimension_numbers<[1], [0], [0], [1], [0, 0, 1, 1], [], []>} : vector<32x16xbf16>, vector<16x256xbf16>, vector<32x256xf32> -> vector<32x256xf32>
    %21 = arith.addf %16, %20 : vector<32x256xf32>
    %22 = vector.broadcast %7 : vector<1x256xf32> to vector<32x256xf32>
    %23 = arith.addf %21, %22 : vector<32x256xf32>
    %c0_18 = arith.constant 0 : index
    %c0_19 = arith.constant 0 : index
    %24 = vector.load %arg11[%c0_18, %c0_19] : memref<64x256xf32, #tpu.memory_space<vmem>>, vector<32x256xf32>
    tpu.vector_store %arg11[%c0_18, %c0_19], %23 {strides = array<i32>} : memref<64x256xf32, #tpu.memory_space<vmem>>, vector<32x256xf32>,
    %c0_20 = arith.constant 0 : index
    %c0_21 = arith.constant 0 : index
    %c0_22 = arith.constant 0 : index
    %25 = vector.load %arg3[%c0_20, %c0_21, %c0_22] : memref<3x32x16xbf16, #tpu.memory_space<vmem>>, vector<1x32x16xbf16>
    %26 = vector.shape_cast %25 : vector<1x32x16xbf16> to vector<32x16xbf16>
    %27 = vector.extract_strided_slice %6 {offsets = [16, 0], sizes = [16, 256], strides = [1, 1]} : vector<32x768xbf16> to vector<16x256xbf16>
    %cst_23 = arith.constant dense<0.000000e+00> : vector<32x256xf32>
    %28 = tpu.matmul %26, %27, %cst_23 {dimension_numbers = #tpu.dot_dimension_numbers<[1], [0], [0], [1], [0, 0, 1, 1], [], []>} : vector<32x16xbf16>, vector<16x256xbf16>, vector<32x256xf32> -> vector<32x256xf32>
    %c1_24 = arith.constant 1 : index
    %c0_25 = arith.constant 0 : index
    %c0_26 = arith.constant 0 : index
    %29 = vector.load %arg3[%c1_24, %c0_25, %c0_26] : memref<3x32x16xbf16, #tpu.memory_space<vmem>>, vector<1x32x16xbf16>
    %30 = vector.shape_cast %29 : vector<1x32x16xbf16> to vector<32x16xbf16>
    %31 = vector.extract_strided_slice %6 {offsets = [16, 256], sizes = [16, 256], strides = [1, 1]} : vector<32x768xbf16> to vector<16x256xbf16>
    %cst_27 = arith.constant dense<0.000000e+00> : vector<32x256xf32>
    %32 = tpu.matmul %30, %31, %cst_27 {dimension_numbers = #tpu.dot_dimension_numbers<[1], [0], [0], [1], [0, 0, 1, 1], [], []>} : vector<32x16xbf16>, vector<16x256xbf16>, vector<32x256xf32> -> vector<32x256xf32>
    %33 = arith.addf %28, %32 : vector<32x256xf32>
    %c2_28 = arith.constant 2 : index
    %c0_29 = arith.constant 0 : index
    %c0_30 = arith.constant 0 : index
    %34 = vector.load %arg3[%c2_28, %c0_29, %c0_30] : memref<3x32x16xbf16, #tpu.memory_space<vmem>>, vector<1x32x16xbf16>
    %35 = vector.shape_cast %34 : vector<1x32x16xbf16> to vector<32x16xbf16>
    %36 = vector.extract_strided_slice %6 {offsets = [16, 512], sizes = [16, 256], strides = [1, 1]} : vector<32x768xbf16> to vector<16x256xbf16>
    %cst_31 = arith.constant dense<0.000000e+00> : vector<32x256xf32>
    %37 = tpu.matmul %35, %36, %cst_31 {dimension_numbers = #tpu.dot_dimension_numbers<[1], [0], [0], [1], [0, 0, 1, 1], [], []>} : vector<32x16xbf16>, vector<16x256xbf16>, vector<32x256xf32> -> vector<32x256xf32>
    %38 = arith.addf %33, %37 : vector<32x256xf32>
    %39 = vector.broadcast %7 : vector<1x256xf32> to vector<32x256xf32>
    %40 = arith.addf %38, %39 : vector<32x256xf32>
    %c32 = arith.constant 32 : index
    %c0_32 = arith.constant 0 : index
    %41 = vector.load %arg11[%c32, %c0_32] : memref<64x256xf32, #tpu.memory_space<vmem>>, vector<32x256xf32>
    tpu.vector_store %arg11[%c32, %c0_32], %40 {strides = array<i32>} : memref<64x256xf32, #tpu.memory_space<vmem>>, vector<32x256xf32>,
    %c0_33 = arith.constant 0 : index
    %c0_34 = arith.constant 0 : index
    %42 = vector.load %arg11[%c0_33, %c0_34] : memref<64x256xf32, #tpu.memory_space<vmem>>, vector<64x256xf32>
    %cst_35 = arith.constant dense<0.000000e+00> : vector<256xf32>
    %43 = vector.multi_reduction <add>, %42, %cst_35 [0] : vector<64x256xf32> to vector<256xf32>
    %44 = vector.shape_cast %43 : vector<256xf32> to vector<1x256xf32>
    %c0_36 = arith.constant 0 : index
    %c0_37 = arith.constant 0 : index
    %45 = vector.load %arg5[%c0_36, %c0_37] : memref<256x8xf32, #tpu.memory_space<vmem>>, vector<256x8xf32>
    %cst_38 = arith.constant dense<0.000000e+00> : vector<1x8xf32>
    %46 = tpu.matmul %44, %45, %cst_38 {dimension_numbers = #tpu.dot_dimension_numbers<[1], [0], [0], [1], [0, 0, 1, 1], [], []>} : vector<1x256xf32>, vector<256x8xf32>, vector<1x8xf32> -> vector<1x8xf32>
    %cst_39 = arith.constant 4.8828125E-4 : f32
    %47 = vector.broadcast %cst_39 : f32 to vector<1x8xf32>
    %48 = arith.mulf %46, %47 : vector<1x8xf32>
    %c0_40 = arith.constant 0 : index
    %c0_41 = arith.constant 0 : index
    %49 = vector.load %arg6[%c0_40, %c0_41] : memref<8x256xf32, #tpu.memory_space<vmem>>, vector<8x256xf32>
    %cst_42 = arith.constant dense<0.000000e+00> : vector<1x256xf32>
    %50 = tpu.matmul %48, %49, %cst_42 {dimension_numbers = #tpu.dot_dimension_numbers<[1], [0], [0], [1], [0, 0, 1, 1], [], []>} : vector<1x8xf32>, vector<8x256xf32>, vector<1x256xf32> -> vector<1x256xf32>
    %51 = vector.broadcast %50 : vector<1x256xf32> to vector<64x256xf32>
    %52 = arith.subf %42, %51 : vector<64x256xf32>
    %53 = arith.mulf %52, %52 : vector<64x256xf32>
    %cst_43 = arith.constant dense<0.000000e+00> : vector<256xf32>
    %54 = vector.multi_reduction <add>, %53, %cst_43 [0] : vector<64x256xf32> to vector<256xf32>
    %55 = vector.shape_cast %54 : vector<256xf32> to vector<1x256xf32>
    %c0_44 = arith.constant 0 : index
    %c0_45 = arith.constant 0 : index
    %56 = vector.load %arg5[%c0_44, %c0_45] : memref<256x8xf32, #tpu.memory_space<vmem>>, vector<256x8xf32>
    %cst_46 = arith.constant dense<0.000000e+00> : vector<1x8xf32>
    %57 = tpu.matmul %55, %56, %cst_46 {dimension_numbers = #tpu.dot_dimension_numbers<[1], [0], [0], [1], [0, 0, 1, 1], [], []>} : vector<1x256xf32>, vector<256x8xf32>, vector<1x8xf32> -> vector<1x8xf32>
    %cst_47 = arith.constant 4.8828125E-4 : f32
    %58 = vector.broadcast %cst_47 : f32 to vector<1x8xf32>
    %59 = arith.mulf %57, %58 : vector<1x8xf32>
    %c0_48 = arith.constant 0 : index
    %c0_49 = arith.constant 0 : index
    %60 = vector.load %arg7[%c0_48, %c0_49] : memref<1x8xf32, #tpu.memory_space<vmem>>, vector<1x8xf32>
    %cst_50 = arith.constant 9.99999974E-6 : f32
    %61 = vector.broadcast %cst_50 : f32 to vector<1x8xf32>
    %62 = arith.addf %59, %61 : vector<1x8xf32>
    %63 = math.rsqrt %62 : vector<1x8xf32>
    %64 = arith.mulf %60, %63 : vector<1x8xf32>
    %c0_51 = arith.constant 0 : index
    %c0_52 = arith.constant 0 : index
    %65 = vector.load %arg6[%c0_51, %c0_52] : memref<8x256xf32, #tpu.memory_space<vmem>>, vector<8x256xf32>
    %cst_53 = arith.constant dense<0.000000e+00> : vector<1x256xf32>
    %66 = tpu.matmul %64, %65, %cst_53 {dimension_numbers = #tpu.dot_dimension_numbers<[1], [0], [0], [1], [0, 0, 1, 1], [], []>} : vector<1x8xf32>, vector<8x256xf32>, vector<1x256xf32> -> vector<1x256xf32>
    %c0_54 = arith.constant 0 : index
    %c0_55 = arith.constant 0 : index
    %67 = vector.load %arg8[%c0_54, %c0_55] : memref<1x8xf32, #tpu.memory_space<vmem>>, vector<1x8xf32>
    %c0_56 = arith.constant 0 : index
    %c0_57 = arith.constant 0 : index
    %68 = vector.load %arg6[%c0_56, %c0_57] : memref<8x256xf32, #tpu.memory_space<vmem>>, vector<8x256xf32>
    %cst_58 = arith.constant dense<0.000000e+00> : vector<1x256xf32>
    %69 = tpu.matmul %67, %68, %cst_58 {dimension_numbers = #tpu.dot_dimension_numbers<[1], [0], [0], [1], [0, 0, 1, 1], [], []>} : vector<1x8xf32>, vector<8x256xf32>, vector<1x256xf32> -> vector<1x256xf32>
    %70 = vector.broadcast %66 : vector<1x256xf32> to vector<64x256xf32>
    %71 = arith.mulf %52, %70 : vector<64x256xf32>
    %72 = vector.broadcast %69 : vector<1x256xf32> to vector<64x256xf32>
    %73 = arith.addf %71, %72 : vector<64x256xf32>
    %c0_59 = arith.constant 0 : index
    %c0_60 = arith.constant 0 : index
    %74 = vector.load %arg9[%c0_59, %c0_60] : memref<1x1xf32, #tpu.memory_space<vmem>>, vector<1x1xf32>
    %cst_61 = arith.constant 0.000000e+00 : f32
    %75 = vector.broadcast %cst_61 : f32 to vector<64x256xf32>
    %76 = arith.cmpf oge, %73, %75 : vector<64x256xf32>
    %77 = vector.broadcast %74 : vector<1x1xf32> to vector<64x256xf32>
    %78 = arith.mulf %77, %73 : vector<64x256xf32>
    %79 = arith.select %76, %73, %78 : vector<64x256xi1>, vector<64x256xf32>
    %c0_62 = arith.constant 0 : index
    %c0_63 = arith.constant 0 : index
    %80 = vector.load %arg10[%c0_62, %c0_63] : memref<64x256xf32, #tpu.memory_space<vmem>>, vector<64x256xf32>
    tpu.vector_store %arg10[%c0_62, %c0_63], %79 {strides = array<i32>} : memref<64x256xf32, #tpu.memory_space<vmem>>, vector<64x256xf32>,
    return
  }
}

</mosaic_0001>

<bundles_post_ra>
// kernel: upsample_forward.1
= control target key start
LH: loop header
LB: loop body
LE: loop exit
PB: predicated region body
PF: predicated region fallthrough
CT: control target
= control target key end

     0   :  { %vm84_vm0 = vcmask 523264   ;;  %v2119_v39 = vmov 0   ;;  %vm621_vm1 = vcmask 130048   ;;  %vm1249_vm2 = vcmask 64512   ;;  %s2820_s1 = inlined_call_operand.vmem [shape: bf16[64,128], index: 1, kind: input, shape index: {}]   ;;  %s2821_s0 = inlined_call_operand.vmem [shape: bf16[32,64], index: 0, kind: input, shape index: {}]   ;;  %s2822_s2 = inlined_call_operand.vmem [shape: bf16[128,768], index: 2, kind: input, shape index: {}]   ;;  %s2823_s3 = inlined_call_operand.vmem [shape: bf16[3,32,16], index: 3, kind: input, shape index: {}]   ;;  %s2824_s5 = inlined_call_operand.vmem [shape: f32[256,8], index: 5, kind: input, shape index: {}]   ;;  %s2825_s4 = inlined_call_operand.vmem [shape: f32[1,256], index: 4, kind: input, shape index: {}]   ;;  %s2826_s6 = inlined_call_operand.vmem [shape: f32[8,256], index: 6, kind: input, shape index: {}]   ;;  %s2827_s9 = inlined_call_operand.<no memory space> [shape: f32[1,1], index: 9, kind: input, shape index: {}]   ;;  %s2828_s7 = inlined_call_operand.vmem [shape: f32[1,8], index: 7, kind: input, shape index: {}]   ;;  %s2829_s8 = inlined_call_operand.vmem [shape: f32[1,8], index: 8, kind: input, shape index: {}]   ;;  %s2830_s10 = inlined_call_operand.vmem [shape: f32[64,256], index: 10, kind: output, shape index: {}]  }
   0x1   :  { %v2027_v0 = vld [vmem:[%s2820_s1] sm:$0xff]   ;;  %v2028_v1 = vld [vmem:[%s2820_s1 + $0x8] sm:$0xff]   ;;  %v2029_v2 = vld [vmem:[%s2820_s1 + $0x10] sm:$0xff]   ;;  %515 = vmatprep.mubr.bf16.mxu0 %v2119_v39  ;;  %2026 = vset.pattern.permute.xlu0 %v2119_v39 }
   0x2   :  { %1916 = vmatprep.subr.bf16.mxu1 %v2027_v0  ;;  %v2031_v3 = vld [vmem:[%s2821_s0] sm:$0xff]   ;;  %v2030_v4 = vld [vmem:[%s2820_s1 + $0x18] sm:$0xff]   ;;  %v2032_v10 = vld [vmem:[%s2821_s0 + $0x8] sm:$0xff]  }
   0x3   :  { %1917 = vmatpush3.bf16.msra.mxu1 %v2027_v0  ;;  %1924 = vmatprep.mubr.msk.bf16.mxu1 %vm84_vm0, %v2031_v3  ;;  %v2036_v5 = vld [vmem:[%s2822_s2 + $0xc] ss:$24 sps:$4 sm:$0xff]   ;;  %v2038_v6 = vld [vmem:[%s2822_s2 + $0x8] ss:$24 sps:$4 sm:$0xff]   ;;  %v2042_v7 = vld [vmem:[%s2822_s2 + $0x3c] ss:$24 sps:$4 sm:$0xff]  }
   0x4   :  { %1918 = vmatprep.subr.bf16.mxu1 %v2028_v1  ;;  %483 = vmatprep.subr.bf16.mxu0 %v2036_v5  ;;  %v2044_v8 = vld [vmem:[%s2822_s2 + $0x38] ss:$24 sps:$4 sm:$0xff]   ;;  %v2035_v9 = vld [vmem:[%s2822_s2 + $0x4] ss:$24 sps:$4 sm:$0xff]   ;;  %v2050_v13 = vld [vmem:[%s2822_s2 + $0x68] ss:$24 sps:$4 sm:$0xff]  }
   0x5   :  { %484 = vmatpush1.bf16.msra.mxu0 %v2038_v6  ;;  %v2048_v11 = vld [vmem:[%s2822_s2 + $0x6c] ss:$24 sps:$4 sm:$0xff]   ;;  %v2033_v12 = vld [vmem:[%s2822_s2] ss:$24 sps:$4 sm:$0xff]   ;;  %v2054_v15 = vld [vmem:[%s2822_s2 + $0x9c] ss:$24 sps:$4 sm:$0xff]  }
   0x6   :  { %485 = vmatprep.subr.bf16.mxu0 %v2042_v7  ;;  %v2041_v14 = vld [vmem:[%s2822_s2 + $0x34] ss:$24 sps:$4 sm:$0xff]   ;;  %v2039_v16 = vld [vmem:[%s2822_s2 + $0x30] ss:$24 sps:$4 sm:$0xff]   ;;  %v2047_v18 = vld [vmem:[%s2822_s2 + $0x64] ss:$24 sps:$4 sm:$0xff]  }
   0x7   :  { %1919 = vmatpush3.bf16.msra.mxu1 %v2028_v1  ;;  %v2056_v17 = vld [vmem:[%s2822_s2 + $0x98] ss:$24 sps:$4 sm:$0xff]   ;;  %v2060_v19 = vld [vmem:[%s2822_s2 + $0xcc] ss:$24 sps:$4 sm:$0xff]   ;;  %v2062_v21 = vld [vmem:[%s2822_s2 + $0xc8] ss:$24 sps:$4 sm:$0xff]  }
   0x8   :  { %1920 = vmatprep.subr.bf16.mxu1 %v2029_v2  ;;  %v2045_v20 = vld [vmem:[%s2822_s2 + $0x60] ss:$24 sps:$4 sm:$0xff]   ;;  %v2053_v22 = vld [vmem:[%s2822_s2 + $0x94] ss:$24 sps:$4 sm:$0xff]   ;;  %v2051_v24 = vld [vmem:[%s2822_s2 + $0x90] ss:$24 sps:$4 sm:$0xff]  }
   0x9   :  { %486 = vmatpush1.bf16.msra.mxu0 %v2044_v8  ;;  %v2066_v23 = vld [vmem:[%s2822_s2 + $0xfc] ss:$24 sps:$4 sm:$0xff]   ;;  %v2068_v25 = vld [vmem:[%s2822_s2 + $0xf8] ss:$24 sps:$4 sm:$0xff]   ;;  %v2072_v27 = vld [vmem:[%s2822_s2 + $0x12c] ss:$24 sps:$4 sm:$0xff]  }
   0xa   :  { %487 = vmatprep.subr.bf16.mxu0 %v2048_v11  ;;  %v2059_v26 = vld [vmem:[%s2822_s2 + $0xc4] ss:$24 sps:$4 sm:$0xff]   ;;  %v2057_v28 = vld [vmem:[%s2822_s2 + $0xc0] ss:$24 sps:$4 sm:$0xff]   ;;  %v2065_v30 = vld [vmem:[%s2822_s2 + $0xf4] ss:$24 sps:$4 sm:$0xff]  }
   0xb   :  { %1921 = vmatpush3.bf16.msra.mxu1 %v2029_v2  ;;  %v2074_v29 = vld [vmem:[%s2822_s2 + $0x128] ss:$24 sps:$4 sm:$0xff]   ;;  %v2071_v32 = vld [vmem:[%s2822_s2 + $0x124] ss:$24 sps:$4 sm:$0xff]   ;;  %v2077_v34 = vld [vmem:[%s2822_s2 + $0x154] ss:$24 sps:$4 sm:$0xff]  }
   0xc   :  { %1922 = vmatprep.subr.bf16.mxu1 %v2030_v4  ;;  %v2063_v31 = vld [vmem:[%s2822_s2 + $0xf0] ss:$24 sps:$4 sm:$0xff]   ;;  %v2069_v33 = vld [vmem:[%s2822_s2 + $0x120] ss:$24 sps:$4 sm:$0xff]   ;;  %v2078_v36 = vld [vmem:[%s2822_s2 + $0x15c] ss:$24 sps:$4 sm:$0xff]  }
   0xd   :  { %488 = vmatpush1.bf16.msra.mxu0 %v2050_v13  ;;  %v2075_v35 = vld [vmem:[%s2822_s2 + $0x150] ss:$24 sps:$4 sm:$0xff]   ;;  %v2083_v38 = vld [vmem:[%s2822_s2 + $0x14] ss:$24 sps:$4 sm:$0xff]   ;;  %v2086_v47 = vld [vmem:[%s2822_s2 + $0x44] ss:$24 sps:$4 sm:$0xff]  }
   0xe   :  { %489 = vmatprep.subr.bf16.mxu0 %v2054_v15  ;;  %v2080_v37 = vld [vmem:[%s2822_s2 + $0x158] ss:$24 sps:$4 sm:$0xff]   ;;  %v2089_v49 = vld [vmem:[%s2822_s2 + $0x74] ss:$24 sps:$4 sm:$0xff]   ;;  %v2092_v51 = vld [vmem:[%s2822_s2 + $0xa4] ss:$24 sps:$4 sm:$0xff]  }
   0xf   :  { %1923 = vmatpush3.bf16.msra.mxu1 %v2030_v4  ;;  %v2081_v45 = vld [vmem:[%s2822_s2 + $0x10] ss:$24 sps:$4 sm:$0xff]   ;;  %v2084_v48 = vld [vmem:[%s2822_s2 + $0x40] ss:$24 sps:$4 sm:$0xff]   ;;  %v2095_v53 = vld [vmem:[%s2822_s2 + $0xd4] ss:$24 sps:$4 sm:$0xff]  }
  0x10   :  { %430 = vmatprep.subr.bf16.mxu1 %v2035_v9  ;;  %v2087_v50 = vld [vmem:[%s2822_s2 + $0x70] ss:$24 sps:$4 sm:$0xff]   ;;  %v2090_v52 = vld [vmem:[%s2822_s2 + $0xa0] ss:$24 sps:$4 sm:$0xff]   ;;  %v2098_v55 = vld [vmem:[%s2822_s2 + $0x104] ss:$24 sps:$4 sm:$0xff]  }
  0x11   :  { %490 = vmatpush1.bf16.msra.mxu0 %v2056_v17  ;;  %v2093_v54 = vld [vmem:[%s2822_s2 + $0xd0] ss:$24 sps:$4 sm:$0xff]   ;;  %v2096_v56 = vld [vmem:[%s2822_s2 + $0x100] ss:$24 sps:$4 sm:$0xff]   ;;  %v2101_v57 = vld [vmem:[%s2822_s2 + $0x134] ss:$24 sps:$4 sm:$0xff]  }
  0x12   :  { %1925 = vmatmul.mubr.msk.bf16.vlgmr.msra.gmra.mrb[0].mxu1 %vm84_vm0, %v2032_v10  ;;  %491 = vmatprep.subr.bf16.mxu0 %v2060_v19  ;;  %v2099_v58 = vld [vmem:[%s2822_s2 + $0x130] ss:$24 sps:$4 sm:$0xff]   ;;  %v2104_v59 = vld [vmem:[%s2822_s2 + $0x164] ss:$24 sps:$4 sm:$0xff]   ;;  %v2102_v60 = vld [vmem:[%s2822_s2 + $0x160] ss:$24 sps:$4 sm:$0xff]  }
  0x13   :  { %431 = vmatpush1.bf16.msra.mxu1 %v2033_v12  ;;  %462 = vmatprep.mubr.bf16.mxu1 %v2119_v39  ;;  %v2105_v9 = vld [vmem:[%s2823_s3 + $0x10] sm:$0xff]  }
  0x14   :  { %432 = vmatprep.subr.bf16.mxu1 %v2041_v14 }
  0x15   :  { %492 = vmatpush1.bf16.msra.mxu0 %v2062_v21 }
  0x16   :  { %493 = vmatprep.subr.bf16.mxu0 %v2066_v23  ;;  %v2107_v23 = vld [vmem:[%s2823_s3 + $0x10] sm:$0xff]  }
  0x17   :  { %433 = vmatpush1.bf16.msra.mxu1 %v2039_v16 }
  0x18   :  { %434 = vmatprep.subr.bf16.mxu1 %v2047_v18 }
  0x19   :  { %494 = vmatpush1.bf16.msra.mxu0 %v2068_v25  ;;  %v2109_v25 = vld [vmem:[%s2823_s3 + $0x18] sm:$0xff]  }
  0x1a   :  { %495 = vmatprep.subr.bf16.mxu0 %v2072_v27  ;;  %v2111_v27 = vld [vmem:[%s2823_s3] sm:$0xff]  }
  0x1b   :  { %435 = vmatpush1.bf16.msra.mxu1 %v2045_v20 }
  0x1c   :  { %436 = vmatprep.subr.bf16.mxu1 %v2053_v22  ;;  %v2106_v22 = vld [vmem:[%s2823_s3 + $0x18] sm:$0xff]  }
  0x1d   :  { %496 = vmatpush1.bf16.msra.mxu0 %v2074_v29 }
  0x1e   :  { %497 = vmatprep.subr.bf16.mxu0 %v2078_v36 }
  0x1f   :  { %437 = vmatpush1.bf16.msra.mxu1 %v2051_v24  ;;  %v2108_v24 = vld [vmem:[%s2823_s3] sm:$0xff]  }
  0x20   :  { %438 = vmatprep.subr.bf16.mxu1 %v2059_v26  ;;  %v2110_v26 = vld [vmem:[%s2823_s3 + $0x8] sm:$0xff]  }
  0x21   :  { %498 = vmatpush1.bf16.msra.mxu0 %v2080_v37 }
  0x23   :  { %439 = vmatpush1.bf16.msra.mxu1 %v2057_v28 }
  0x24   :  { %440 = vmatprep.subr.bf16.mxu1 %v2065_v30 }
  0x27   :  { %441 = vmatpush1.bf16.msra.mxu1 %v2063_v31 }
  0x28   :  { %442 = vmatprep.subr.bf16.mxu1 %v2071_v32 }
  0x2b   :  { %443 = vmatpush1.bf16.msra.mxu1 %v2069_v33 }
  0x2c   :  { %444 = vmatprep.subr.bf16.mxu1 %v2077_v34  ;;  %v2112_v34 = vld [vmem:[%s2823_s3 + $0x20] sm:$0xff]  }
  0x2f   :  { %445 = vmatpush1.bf16.msra.mxu1 %v2075_v35  ;;  %v2113_v35 = vld [vmem:[%s2823_s3 + $0x8] sm:$0xff]  }
  0x30   :  { %536 = vmatprep.subr.bf16.mxu1 %v2083_v38 }
  0xe5   :  { %v1926_v40 = vpop.f32.mrb[0].mxu1 }
  0xe6   :  { %v125_v41 = vpop.f32.mrb[1].mxu1 }
  0xe7   :  { %v1927_v42 = vpop.f32.mrb[2].mxu1 }
  0xe8   :  { %v141_v43 = vpack.c.bf16 %v1927_v42, %v1926_v40  ;;  %v128_v44 = vpop.f32.mrb[3].mxu1 }
  0xe9   :  { %v140_v46 = vpack.c.bf16 %v128_v44, %v125_v41  ;;  %v2115_v44 = vld [vmem:[%s2823_s3 + $0x20] sm:$0xff]  }
  0xeb   :  { %463 = vmatmul.mubr.bf16.vlgmr.msra.gmra.mrb[4].mxu1 %v140_v46  ;;  %516 = vmatmul.mubr.bf16.vlgmr.msra.gmra.mrb[0].mxu0 %v140_v46 }
  0xec   :  { %537 = vmatpush1.bf16.msra.mxu1 %v2081_v45  ;;  %472 = vmatprep.mubr.bf16.mxu1 %v2119_v39  ;;  %v2116_v45 = vld [vmem:[%s2823_s3 + $0x28] sm:$0xff]  }
  0xed   :  { %538 = vmatprep.subr.bf16.mxu1 %v2086_v47  ;;  %525 = vmatprep.mubr.bf16.mxu0 %v2119_v39  ;;  %v1161_v47 = vld [vmem:[%s2824_s5 + $0x88] sm:$0xff] }
  0xf0   :  { %539 = vmatpush1.bf16.msra.mxu1 %v2084_v48 }
  0xf1   :  { %540 = vmatprep.subr.bf16.mxu1 %v2089_v49  ;;  %v1145_v49 = vld [vmem:[%s2824_s5 + $0x8] sm:$0xff] }
  0xf3   :  { %473 = vmatmul.mubr.bf16.gmra.mrb[8].mxu1 %v141_v43  ;;  %526 = vmatmul.mubr.bf16.gmra.mrb[4].mxu0 %v141_v43 }
  0xf4   :  { %541 = vmatpush1.bf16.msra.mxu1 %v2087_v50  ;;  %568 = vmatprep.mubr.bf16.mxu1 %v2119_v39 }
  0xf5   :  { %542 = vmatprep.subr.bf16.mxu1 %v2092_v51  ;;  %660 = vmatprep.mubr.bf16.mxu0 %v2119_v39  ;;  %v1162_v51 = vld [vmem:[%s2824_s5 + $0x90] sm:$0xff] }
  0xf8   :  { %543 = vmatpush1.bf16.msra.mxu1 %v2090_v52  ;;  %v1163_v52 = vld [vmem:[%s2824_s5 + $0x98] sm:$0xff] }
  0xf9   :  { %544 = vmatprep.subr.bf16.mxu1 %v2095_v53  ;;  %v2431_v53 = vpack.c.bf16 %v1163_v52, %v1162_v51 }
  0xfc   :  { %545 = vmatpush1.bf16.msra.mxu1 %v2093_v54  ;;  %v1146_v54 = vld [vmem:[%s2824_s5 + $0x10] sm:$0xff] }
  0xfd   :  { %546 = vmatprep.subr.bf16.mxu1 %v2098_v55  ;;  %v1147_v55 = vld [vmem:[%s2824_s5 + $0x18] sm:$0xff] }
 0x100   :  { %547 = vmatpush1.bf16.msra.mxu1 %v2096_v56  ;;  %v2439_v56 = vpack.c.bf16 %v1147_v55, %v1146_v54 }
 0x101   :  { %548 = vmatprep.subr.bf16.mxu1 %v2101_v57  ;;  %v1164_v57 = vld [vmem:[%s2824_s5 + $0xa0] sm:$0xff] }
 0x104   :  { %549 = vmatpush1.bf16.msra.mxu1 %v2099_v58  ;;  %v1165_v58 = vld [vmem:[%s2824_s5 + $0xa8] sm:$0xff] }
 0x105   :  { %550 = vmatprep.subr.bf16.mxu1 %v2104_v59  ;;  %v2449_v59 = vpack.c.bf16 %v1165_v58, %v1164_v57 }
 0x108   :  { %551 = vmatpush1.bf16.msra.mxu1 %v2102_v60  ;;  %v1148_v60 = vld [vmem:[%s2824_s5 + $0x20] sm:$0xff] }
 0x10b   :  { %569 = vmatmul.mubr.bf16.vlgmr.msra.gmra.mrb[12].mxu1 %v140_v46  ;;  %v1160_v46 = vld [vmem:[%s2824_s5 + $0x80] sm:$0xff] }
 0x10c   :  { %578 = vmatprep.mubr.bf16.mxu1 %v2119_v39  ;;  %v2413_v48 = vpack.c.bf16 %v1161_v47, %v1160_v46 }
 0x113   :  { %579 = vmatmul.mubr.bf16.gmra.mrb[16].mxu1 %v141_v43  ;;  %v2114_v43 = vld [vmem:[%s2823_s3 + $0x28] sm:$0xff]  }
 0x114   :  { %915 = vmatprep.mubr.bf16.mxu1 %v2119_v39 }
 0x1be   :  { %v464_v61 = vpop.f32.mrb[4].mxu1  ;;  %v517_v62 = vpop.f32.mrb[0].mxu0 }
 0x1bf   :  { %v466_v63 = vpop.f32.mrb[5].mxu1  ;;  %v519_v0 = vpop.f32.mrb[1].mxu0 }
 0x1c0   :  { %v468_v1 = vpop.f32.mrb[6].mxu1  ;;  %v521_v2 = vpop.f32.mrb[2].mxu0 }
 0x1c1   :  { %v589_v3 = vpack.c.bf16 %v468_v1, %v464_v61  ;;  %v591_v4 = vpack.c.bf16 %v521_v2, %v517_v62  ;;  %v470_v5 = vpop.f32.mrb[7].mxu1  ;;  %v523_v6 = vpop.f32.mrb[3].mxu0  ;;  %v1149_v61 = vld [vmem:[%s2824_s5 + $0x28] sm:$0xff]  ;;  %v1150_v2 = vld [vmem:[%s2824_s5 + $0x30] sm:$0xff] }
 0x1c2   :  { %v590_v7 = vpack.c.bf16 %v470_v5, %v466_v63  ;;  %v592_v8 = vpack.c.bf16 %v523_v6, %v519_v0  ;;  %v2457_v62 = vpack.c.bf16 %v1149_v61, %v1148_v60  ;;  %v1166_v63 = vld [vmem:[%s2824_s5 + $0xb0] sm:$0xff]  ;;  %v1167_v0 = vld [vmem:[%s2824_s5 + $0xb8] sm:$0xff]  ;;  %v1168_v5 = vld [vmem:[%s2824_s5 + $0xc0] sm:$0xff] }
 0x1c3   :  { %v2467_v1 = vpack.c.bf16 %v1167_v0, %v1166_v63  ;;  %v1169_v6 = vld [vmem:[%s2824_s5 + $0xc8] sm:$0xff] }
 0x1c4   :  { %628 = vmatprep.subr.bf16.mxu0 %v592_v8  ;;  %v1152_v8 = vld [vmem:[%s2824_s5 + $0x40] sm:$0xff] }
 0x1c5   :  { %629 = vmatpush1.bf16.msra.mxu0 %v591_v4 }
 0x1c6   :  { %v474_v10 = vpop.f32.mrb[8].mxu1  ;;  %v527_v11 = vpop.f32.mrb[4].mxu0  ;;  %697 = vmatprep.subr.bf16.mxu0 %v590_v7  ;;  %v2485_v7 = vpack.c.bf16 %v1169_v6, %v1168_v5 }
 0x1c7   :  { %v476_v12 = vpop.f32.mrb[9].mxu1  ;;  %v529_v13 = vpop.f32.mrb[5].mxu0 }
 0x1c8   :  { %v478_v14 = vpop.f32.mrb[10].mxu1  ;;  %v531_v15 = vpop.f32.mrb[6].mxu0  ;;  %1802 = vmatmul.mubr.msk.bf16.vlgmr.msra.gmra.mrb[8].mxu0 %vm621_vm1, %v2105_v9  ;;  %v1153_v9 = vld [vmem:[%s2824_s5 + $0x48] sm:$0xff] }
 0x1c9   :  { %v595_v16 = vpack.c.bf16 %v478_v14, %v474_v10  ;;  %v597_v17 = vpack.c.bf16 %v531_v15, %v527_v11  ;;  %v480_v18 = vpop.f32.mrb[11].mxu1  ;;  %v533_v19 = vpop.f32.mrb[7].mxu0  ;;  %698 = vmatpush1.bf16.msra.mxu0 %v589_v3  ;;  %670 = vmatprep.mubr.bf16.mxu0 %v2119_v39  ;;  %v1151_v3 = vld [vmem:[%s2824_s5 + $0x38] sm:$0xff]  ;;  %v2493_v10 = vpack.c.bf16 %v1153_v9, %v1152_v8  ;;  %v1170_v11 = vld [vmem:[%s2824_s5 + $0xd0] sm:$0xff] }
 0x1ca   :  { %v596_v20 = vpack.c.bf16 %v480_v18, %v476_v12  ;;  %v598_v21 = vpack.c.bf16 %v533_v19, %v529_v13  ;;  %v2475_v4 = vpack.c.bf16 %v1151_v3, %v1150_v2  ;;  %v1171_v12 = vld [vmem:[%s2824_s5 + $0xd8] sm:$0xff]  ;;  %v1154_v14 = vld [vmem:[%s2824_s5 + $0x50] sm:$0xff]  ;;  %v1173_v18 = vld [vmem:[%s2824_s5 + $0xe8] sm:$0xff] }
 0x1cb   :  { %v2503_v13 = vpack.c.bf16 %v1171_v12, %v1170_v11  ;;  %v1155_v15 = vld [vmem:[%s2824_s5 + $0x58] sm:$0xff] }
 0x1cc   :  { %883 = vmatprep.subr.bf16.mxu1 %v598_v21  ;;  %v1157_v21 = vld [vmem:[%s2824_s5 + $0x68] sm:$0xff] }
 0x1cd   :  { %884 = vmatpush1.bf16.msra.mxu1 %v597_v17  ;;  %v1172_v17 = vld [vmem:[%s2824_s5 + $0xe0] sm:$0xff] }
 0x1ce   :  { %952 = vmatprep.subr.bf16.mxu1 %v596_v20  ;;  %v2521_v19 = vpack.c.bf16 %v1173_v18, %v1172_v17  ;;  %v1156_v20 = vld [vmem:[%s2824_s5 + $0x60] sm:$0xff] }
 0x1d0   :  { %1803 = vmatmul.mubr.msk.bf16.gmra.mrb[12].mxu0 %vm621_vm1, %v2106_v22  ;;  %1822 = vmatmul.mubr.msk.bf16.vlgmr.msra.gmra.mrb[20].mxu1 %vm621_vm1, %v2107_v23  ;;  %v2529_v22 = vpack.c.bf16 %v1157_v21, %v1156_v20  ;;  %v1174_v23 = vld [vmem:[%s2824_s5 + $0xf0] sm:$0xff] }
 0x1d1   :  { %953 = vmatpush1.bf16.msra.mxu1 %v595_v16  ;;  %729 = vmatprep.mubr.bf16.mxu0 %v2119_v39  ;;  %v2511_v16 = vpack.c.bf16 %v1155_v15, %v1154_v14 }
 0x1d2   :  { %925 = vmatprep.mubr.bf16.mxu1 %v2119_v39 }
 0x1d8   :  { %1806 = vmatmul.mubr.msk.bf16.vlgmr.msra.gmra.mrb[8].mxu0 %vm621_vm1, %v2108_v24  ;;  %1823 = vmatmul.mubr.msk.bf16.gmra.mrb[24].mxu1 %vm621_vm1, %v2109_v25  ;;  %v1175_v24 = vld [vmem:[%s2824_s5 + $0xf8] sm:$0xff] }
 0x1d9   :  { %739 = vmatprep.mubr.bf16.mxu0 %v2119_v39  ;;  %984 = vmatprep.mubr.bf16.mxu1 %v2119_v39  ;;  %v2539_v25 = vpack.c.bf16 %v1175_v24, %v1174_v23 }
 0x1de   :  { %v570_v28 = vpop.f32.mrb[12].mxu1 }
 0x1df   :  { %v572_v29 = vpop.f32.mrb[13].mxu1 }
 0x1e0   :  { %v574_v30 = vpop.f32.mrb[14].mxu1  ;;  %1807 = vmatmul.mubr.msk.bf16.gmra.mrb[12].mxu0 %vm621_vm1, %v2110_v26  ;;  %1826 = vmatmul.mubr.msk.bf16.vlgmr.msra.gmra.mrb[20].mxu1 %vm621_vm1, %v2111_v27  ;;  %v1158_v26 = vld [vmem:[%s2824_s5 + $0x70] sm:$0xff]  ;;  %v1159_v27 = vld [vmem:[%s2824_s5 + $0x78] sm:$0xff] }
 0x1e1   :  { %v593_v31 = vpack.c.bf16 %v574_v30, %v570_v28  ;;  %v576_v32 = vpop.f32.mrb[15].mxu1  ;;  %803 = vmatprep.mubr.bf16.mxu0 %v2119_v39  ;;  %994 = vmatprep.mubr.bf16.mxu1 %v2119_v39  ;;  %v2547_v28 = vpack.c.bf16 %v1159_v27, %v1158_v26 }
 0x1e2   :  { %v594_v33 = vpack.c.bf16 %v576_v32, %v572_v29  ;;  %v833_v29 = vlaneseq  ;;  %v601_v32 = vld [vmem:[%s2825_s4] sm:$0x3] }
 0x1e4   :  { %771 = vmatprep.subr.bf16.mxu0 %v594_v33  ;;  %v834_v30 = vshrl.u32 %v833_v29, 7 }
 0x1e5   :  { %772 = vmatpush1.bf16.msra.mxu0 %v593_v31 }
 0x1e6   :  { %v580_v36 = vpop.f32.mrb[16].mxu1  ;;  %1929 = vmatprep.subr.bf16.mxu0 %v2413_v48  ;;  %v2551_v31 = vsub.s32 0, %v834_v30 }
 0x1e7   :  { %v582_v37 = vpop.f32.mrb[17].mxu1 }
 0x1e8   :  { %v584_v38 = vpop.f32.mrb[18].mxu1  ;;  %1814 = vmatmul.mubr.msk.bf16.vlgmr.msra.gmra.mrb[8].mxu0 %vm621_vm1, %v2112_v34  ;;  %1827 = vmatmul.mubr.msk.bf16.gmra.mrb[24].mxu1 %vm621_vm1, %v2113_v35  ;;  %v839_v34 = vsub.s32 1, %v834_v30 }
 0x1e9   :  { %v599_v40 = vpack.c.bf16 %v584_v38, %v580_v36  ;;  %v586_v41 = vpop.f32.mrb[19].mxu1  ;;  %813 = vmatprep.mubr.bf16.mxu0 %v2119_v39  ;;  %1057 = vmatprep.mubr.bf16.mxu1 %v2119_v39 }
 0x1ea   :  { %v600_v42 = vpack.c.bf16 %v586_v41, %v582_v37  ;;  %v836_v37 = vrot.slane %v601_v32, %v2551_v31 }
 0x1ec   :  { %1025 = vmatprep.subr.bf16.mxu1 %v600_v42 }
 0x1ed   :  { %1026 = vmatpush1.bf16.msra.mxu1 %v599_v40  ;;  %v840_v40 = vrot.slane %v601_v32, %v839_v34 }
 0x1f0   :  { %1815 = vmatmul.mubr.msk.bf16.gmra.mrb[12].mxu0 %vm621_vm1, %v2114_v43  ;;  %1834 = vmatmul.mubr.msk.bf16.vlgmr.msra.gmra.mrb[20].mxu1 %vm621_vm1, %v2115_v44 }
 0x1f1   :  { %1067 = vmatprep.mubr.bf16.mxu1 %v2119_v39  ;;  %v1144_v39 = vld [vmem:[%s2824_s5] sm:$0xff] }
 0x1f2   :  { %v2421_v50 = vpack.c.bf16 %v1145_v49, %v1144_v39 }
 0x1f4   :  { %1931 = vmatpush3.bf16.msra.mxu0 %v2421_v50 }
 0x1f5   :  { %1933 = vmatprep.subr.bf16.mxu0 %v2431_v53 }
 0x1f8   :  { %1835 = vmatmul.mubr.msk.bf16.gmra.mrb[24].mxu1 %vm621_vm1, %v2116_v45  ;;  %1935 = vmatpush3.bf16.msra.mxu0 %v2439_v56 }
 0x1f9   :  { %1937 = vmatprep.subr.bf16.mxu0 %v2449_v59 }
 0x1fc   :  { %1939 = vmatpush3.bf16.msra.mxu0 %v2457_v62 }
 0x1fd   :  { %1941 = vmatprep.subr.bf16.mxu0 %v2467_v1 }
 0x200   :  { %1943 = vmatpush3.bf16.msra.mxu0 %v2475_v4 }
 0x201   :  { %1945 = vmatprep.subr.bf16.mxu0 %v2485_v7 }
 0x204   :  { %1947 = vmatpush3.bf16.msra.mxu0 %v2493_v10 }
 0x205   :  { %1949 = vmatprep.subr.bf16.mxu0 %v2503_v13 }
 0x208   :  { %1951 = vmatpush3.bf16.msra.mxu0 %v2511_v16 }
 0x209   :  { %1953 = vmatprep.subr.bf16.mxu0 %v2521_v19 }
 0x20c   :  { %1955 = vmatpush3.bf16.msra.mxu0 %v2529_v22 }
 0x20d   :  { %1957 = vmatprep.subr.bf16.mxu0 %v2539_v25 }
 0x210   :  { %1959 = vmatpush3.bf16.msra.mxu0 %v2547_v28 }
 0x2bb   :  { %v805_v33 = vpop.f32.mrb[8].mxu0 }
 0x2bc   :  { %v807_v35 = vpop.f32.mrb[9].mxu0  ;;  %v2561_v43 = vadd.f32 %v836_v37, %v805_v33 }
 0x2bd   :  { %v809_v36 = vpop.f32.mrb[10].mxu0  ;;  %v2563_v44 = vadd.f32 %v840_v40, %v807_v35 }
 0x2be   :  { %v811_v38 = vpop.f32.mrb[11].mxu0  ;;  %v2557_v41 = vadd.f32 %v836_v37, %v809_v36 }
 0x2bf   :  { %v2559_v42 = vadd.f32 %v840_v40, %v811_v38 }
 0x2c0   :  { %v1118_v47 = vadd.f32 %v2557_v41, %v2561_v43 }
 0x2c1   :  { %v1131_v52 = vadd.f32 %v2559_v42, %v2563_v44 }
 0x2c3   :  { %v815_v45 = vpop.f32.mrb[12].mxu0  ;;  %v1059_v46 = vpop.f32.mrb[20].mxu1 }
 0x2c4   :  { %v2567_v39 = vadd.f32 %v836_v37, %v815_v45  ;;  %v817_v49 = vpop.f32.mrb[13].mxu0  ;;  %v1061_v51 = vpop.f32.mrb[21].mxu1  ;;  %v2579_v3 = vadd.f32 %v1059_v46, %v836_v37 }
 0x2c5   :  { %v2571_v54 = vadd.f32 %v840_v40, %v817_v49  ;;  %v819_v55 = vpop.f32.mrb[14].mxu0  ;;  %v1063_v57 = vpop.f32.mrb[22].mxu1  ;;  %v2582_v6 = vadd.f32 %v1061_v51, %v840_v40 }
 0x2c6   :  { %v1119_v58 = vadd.f32 %v1118_v47, %v2567_v39  ;;  %v2574_v60 = vadd.f32 %v836_v37, %v819_v55  ;;  %v821_v61 = vpop.f32.mrb[15].mxu0  ;;  %v1065_v63 = vpop.f32.mrb[23].mxu1  ;;  %v2585_v9 = vadd.f32 %v1063_v57, %v836_v37 }
 0x2c7   :  { %v1132_v0 = vadd.f32 %v1131_v52, %v2571_v54  ;;  %v2577_v2 = vadd.f32 %v840_v40, %v821_v61  ;;  %v2588_v12 = vadd.f32 %v1065_v63, %v840_v40  ;;  %v2120_v61 = vmov 0.0  }
 0x2c8   :  { %v1120_v5 = vadd.f32 %v1119_v58, %v2574_v60  ;;  %v2611_v58 = vld [vmem:[%s2826_s6] sm:$0xff]  ;;  %1532 = vmatprep.mubr.f32.mxu1 %v2120_v61 }
 0x2c9   :  { %v1133_v8 = vadd.f32 %v1132_v0, %v2577_v2 }
 0x2ca   :  { %v1121_v11 = vadd.f32 %v1120_v5, %v2579_v3 }
 0x2cb   :  { %v1134_v14 = vadd.f32 %v1133_v8, %v2582_v6  ;;  %v1069_v15 = vpop.f32.mrb[24].mxu1 }
 0x2cc   :  { %v1122_v17 = vadd.f32 %v1121_v11, %v2585_v9  ;;  %v2592_v18 = vadd.f32 %v1069_v15, %v836_v37  ;;  %v1071_v20 = vpop.f32.mrb[25].mxu1 }
 0x2cd   :  { %v1135_v21 = vadd.f32 %v1134_v14, %v2588_v12  ;;  %v2595_v23 = vadd.f32 %v1071_v20, %v840_v40  ;;  %v1073_v24 = vpop.f32.mrb[26].mxu1 }
 0x2ce   :  { %v1123_v26 = vadd.f32 %v1122_v17, %v2592_v18  ;;  %v2598_v27 = vadd.f32 %v1073_v24, %v836_v37  ;;  %v1075_v29 = vpop.f32.mrb[27].mxu1 }
 0x2cf   :  { %v1136_v30 = vadd.f32 %v1135_v21, %v2595_v23  ;;  %v2601_v32 = vadd.f32 %v1075_v29, %v840_v40  ;;  %v1248_v40 = vld [vmem:[%s2826_s6 + $0x8] sm:$0xff] }
 0x2d0   :  { %v1124_v33 = vadd.f32 %v1123_v26, %v2598_v27  ;;  %1253 = vmatprep.subr.mxu0 %v1248_v40  ;;  %1468 = vmatprep.subr.mxu1 %v1248_v40 }
 0x2d1   :  { %v1137_v34 = vadd.f32 %v1136_v30, %v2601_v32  ;;  %1469 = vmatpush1.msra.mxu1 %v2611_v58 }
 0x2d2   :  { %v1125_v35 = vrot.slane %v1124_v33, 4  ;;  %1543 = vmatprep.subr.mxu1 %v1248_v40 }
 0x2d3   :  { %v1138_v36 = vrot.slane %v1137_v34, 4 }
 0x2d4   :  { %v1126_v38 = vadd.f32 %v1125_v35, %v1124_v33 }
 0x2d5   :  { %v1139_v45 = vadd.f32 %v1138_v36, %v1137_v34 }
 0x2d6   :  { %v1127_v46 = vrot.slane %v1126_v38, 2 }
 0x2d7   :  { %v1140_v47 = vrot.slane %v1139_v45, 2 }
 0x2d8   :  { %v1128_v49 = vadd.f32 %v1127_v46, %v1126_v38 }
 0x2d9   :  { %v1141_v51 = vadd.f32 %v1140_v47, %v1139_v45 }
 0x2da   :  { %v1129_v52 = vrot.slane %v1128_v49, 1 }
 0x2db   :  { %v1142_v37 = vrot.slane %v1141_v51, 1 }
 0x2dc   :  { %v1130_v57 = vadd.f32 %v1129_v52, %v1128_v49 }
 0x2dd   :  { %v1143_v55 = vadd.f32 %v1142_v37, %v1141_v51 }
 0x2df   :  { %1240 = vmatprep.mubr.f32.mxu0 %v1143_v55 }
 0x2e0   :  { %1241 = vmatmul.mubr.f32.vlgmr.msra.gmra.mrb[16].mxu0 %v1130_v57 }
 0x2e1   :  { %1317 = vmatprep.mubr.f32.mxu0 %v2120_v61  ;;  %1254 = vmatpush1.msra.mxu0 %v2611_v58 }
 0x2e2   :  { %1961 = vmatprep.subr.bf16.mxu0 %v2413_v48 }
 0x3b3   :  { %v1878_v63 = vpop.f32.mrb[16].mxu0 }
 0x3b4   :  { %v1879_v0 = vpop.f32.mrb[17].mxu0 }
 0x3b5   :  { %v1880_v5 = vadd.f32 %v1879_v0, %v1878_v63 }
 0x3b7   :  { %v1246_v8 = vmul.f32 0.00048828125, %v1880_v5 }
 0x3b9   :  { %1836 = vmatmul.mubr.msk.f32.vlgmr.msra.gmra.mrb[18].mxu0 %vm1249_vm2, %v1246_v8 }
 0x3ba   :  { %1963 = vmatpush3.bf16.msra.mxu0 %v2421_v50 }
 0x3bb   :  { %1965 = vmatprep.subr.bf16.mxu0 %v2431_v53 }
 0x3be   :  { %1967 = vmatpush3.bf16.msra.mxu0 %v2439_v56 }
 0x3bf   :  { %1969 = vmatprep.subr.bf16.mxu0 %v2449_v59 }
 0x3c2   :  { %1971 = vmatpush3.bf16.msra.mxu0 %v2457_v62 }
 0x3c3   :  { %1973 = vmatprep.subr.bf16.mxu0 %v2467_v1 }
 0x3c6   :  { %1975 = vmatpush3.bf16.msra.mxu0 %v2475_v4 }
 0x3c7   :  { %1977 = vmatprep.subr.bf16.mxu0 %v2485_v7 }
 0x3ca   :  { %1979 = vmatpush3.bf16.msra.mxu0 %v2493_v10 }
 0x3cb   :  { %1981 = vmatprep.subr.bf16.mxu0 %v2503_v13 }
 0x3ce   :  { %1983 = vmatpush3.bf16.msra.mxu0 %v2511_v16 }
 0x3cf   :  { %1985 = vmatprep.subr.bf16.mxu0 %v2521_v19 }
 0x3d2   :  { %1987 = vmatpush3.bf16.msra.mxu0 %v2529_v22 }
 0x3d3   :  { %1989 = vmatprep.subr.bf16.mxu0 %v2539_v25 }
 0x3d6   :  { %1991 = vmatpush3.bf16.msra.mxu0 %v2547_v28 }
 0x48c   :  { %v1319_v48 = vpop.f32.mrb[18].mxu0 }
 0x48d   :  { %v1327_v50 = vrot.slane %v1319_v48, %v2551_v31  ;;  %v1321_v53 = vpop.f32.mrb[19].mxu0 }
 0x48e   :  { %v1331_v56 = vrot.slane %v1321_v53, %v2551_v31 }
 0x48f   :  { %v2646_v4 = vsub.f32 %v2561_v43, %v1327_v50  ;;  %v2649_v7 = vsub.f32 %v2557_v41, %v1327_v50  ;;  %v2659_v19 = vsub.f32 %v2567_v39, %v1327_v50  ;;  %v2667_v41 = vsub.f32 %v2574_v60, %v1327_v50 }
 0x490   :  { %v2637_v59 = vsub.f32 %v2563_v44, %v1331_v56  ;;  %v2640_v62 = vsub.f32 %v2559_v42, %v1331_v56  ;;  %v2643_v1 = vsub.f32 %v2571_v54, %v1331_v56  ;;  %v2652_v10 = vsub.f32 %v2577_v2, %v1331_v56 }
 0x491   :  { %v2662_v22 = vsub.f32 %v2582_v6, %v1331_v56  ;;  %v1348_v42 = vmul.f32 %v2646_v4, %v2646_v4  ;;  %v1350_v43 = vmul.f32 %v2649_v7, %v2649_v7  ;;  %v2674_v44 = vsub.f32 %v2588_v12, %v1331_v56 }
 0x492   :  { %v1349_v13 = vmul.f32 %v2637_v59, %v2637_v59  ;;  %v1351_v16 = vmul.f32 %v2640_v62, %v2640_v62  ;;  %v1353_v25 = vmul.f32 %v2643_v1, %v2643_v1  ;;  %v1355_v39 = vmul.f32 %v2652_v10, %v2652_v10 }
 0x493   :  { %v2679_v2 = vsub.f32 %v2579_v3, %v1327_v50  ;;  %v1352_v60 = vmul.f32 %v2659_v19, %v2659_v19  ;;  %v1364_v6 = vadd.f32 %v1350_v43, %v1348_v42  ;;  %v2684_v11 = vsub.f32 %v2595_v23, %v1331_v56  ;;  %v1461_v42 = vld [vmem:[%s2828_s7] sm:$0x1] }
 0x494   :  { %v1377_v28 = vadd.f32 %v1351_v16, %v1349_v13  ;;  %v1357_v14 = vmul.f32 %v2662_v22, %v2662_v22  ;;  %v2689_v12 = vsub.f32 %v2585_v9, %v1327_v50  ;;  %v1354_v17 = vmul.f32 %v2667_v41, %v2667_v41 }
 0x495   :  { %v1365_v20 = vadd.f32 %v1364_v6, %v1352_v60  ;;  %v2694_v3 = vsub.f32 %v2601_v32, %v1331_v56  ;;  %v1359_v21 = vmul.f32 %v2674_v44, %v2674_v44  ;;  %v2699_v23 = vsub.f32 %v2592_v18, %v1327_v50 }
 0x496   :  { %v1378_v54 = vadd.f32 %v1377_v28, %v1353_v25  ;;  %v1356_v26 = vmul.f32 %v2679_v2, %v2679_v2  ;;  %v1361_v9 = vmul.f32 %v2684_v11, %v2684_v11  ;;  %v1346_v33 = vsub.f32 %v2598_v27, %v1327_v50 }
 0x497   :  { %v1366_v29 = vadd.f32 %v1365_v20, %v1354_v17  ;;  %v1358_v32 = vmul.f32 %v2689_v12, %v2689_v12  ;;  %v1363_v35 = vmul.f32 %v2694_v3, %v2694_v3  ;;  %v1360_v18 = vmul.f32 %v2699_v23, %v2699_v23 }
 0x498   :  { %v1379_v15 = vadd.f32 %v1378_v54, %v1355_v39  ;;  %v1362_v46 = vmul.f32 %v1346_v33, %v1346_v33  ;;  %v15_v50 = vstv %s2827_s9  ;;  %v1539_v54 = vld [vmem:[%s2829_s8] sm:$0x1] }
 0x499   :  { %v1367_v34 = vadd.f32 %v1366_v29, %v1356_v26  ;;  %16 = vst [vmem:[#allocation3] sm:$0x1] %v15_v50 }
 0x49a   :  { %v1380_v24 = vadd.f32 %v1379_v15, %v1357_v14 }
 0x49b   :  { %v1368_v38 = vadd.f32 %v1367_v34, %v1358_v32 }
 0x49c   :  { %v1381_v30 = vadd.f32 %v1380_v24, %v1359_v21 }
 0x49d   :  { %v1369_v47 = vadd.f32 %v1368_v38, %v1360_v18 }
 0x49e   :  { %v1382_v36 = vadd.f32 %v1381_v30, %v1361_v9 }
 0x49f   :  { %v1370_v51 = vadd.f32 %v1369_v47, %v1362_v46 }
 0x4a0   :  { %v1383_v45 = vadd.f32 %v1382_v36, %v1363_v35  ;;  %v1839_v53 = vld [vmem:[#allocation3] ss:$0 sm:$0xff] }
 0x4a1   :  { %v1371_v37 = vrot.slane %v1370_v51, 4  ;;  %1685 = vperm.xlu0 %2026, %v1839_v53  }
 0x4a2   :  { %v1384_v49 = vrot.slane %v1383_v45, 4 }
 0x4a3   :  { %v1372_v55 = vadd.f32 %v1371_v37, %v1370_v51 }
 0x4a4   :  { %v1385_v52 = vadd.f32 %v1384_v49, %v1383_v45 }
 0x4a5   :  { %v1373_v40 = vrot.slane %v1372_v55, 2 }
 0x4a6   :  { %v1386_v27 = vrot.slane %v1385_v52, 2 }
 0x4a7   :  { %v1374_v0 = vadd.f32 %v1373_v40, %v1372_v55 }
 0x4a8   :  { %v1387_v57 = vadd.f32 %v1386_v27, %v1385_v52 }
 0x4a9   :  { %v1375_v8 = vrot.slane %v1374_v0, 1 }
 0x4aa   :  { %v1388_v63 = vrot.slane %v1387_v57, 1 }
 0x4ab   :  { %v1376_v48 = vadd.f32 %v1375_v8, %v1374_v0 }
 0x4ac   :  { %v1389_v5 = vadd.f32 %v1388_v63, %v1387_v57 }
 0x4ae   :  { %1454 = vmatprep.mubr.f32.mxu0 %v1389_v5 }
 0x4af   :  { %1455 = vmatmul.mubr.f32.vlgmr.msra.gmra.mrb[20].mxu0 %v1376_v48 }
 0x520   :  { %v1686_v51 = vpop.permute.xlu0 %1685 }
 0x582   :  { %v1913_v56 = vpop.f32.mrb[20].mxu0 }
 0x583   :  { %v1914_v13 = vpop.f32.mrb[21].mxu0 }
 0x584   :  { %v1915_v16 = vadd.f32 %v1914_v13, %v1913_v56 }
 0x586   :  { %v1460_v25 = vmul.f32 0.00048828125, %v1915_v16 }
 0x588   :  { %v1462_v28 = vadd.f32 1e-05, %v1460_v25 }
 0x58a   :  { %2117 = vrsqrt.f32 %v1462_v28 }
 0x594   :  { %v2118_v43 = vpop.eup %2117 }
 0x595   :  { %v1464_v39 = vmul.f32 %v2118_v43, %v1461_v42 }
 0x597   :  { %1837 = vmatmul.mubr.msk.f32.vlgmr.msra.gmra.mrb[28].mxu1 %vm1249_vm2, %v1464_v39 }
 0x598   :  { %1544 = vmatpush1.msra.mxu1 %v2611_v58  ;;  %1607 = vmatprep.mubr.f32.mxu1 %v2120_v61 }
 0x59b   :  { %1838 = vmatmul.mubr.msk.f32.vlgmr.msra.gmra.mrb[30].mxu1 %vm1249_vm2, %v1539_v54 }
 0x66a   :  { %v1534_v60 = vpop.f32.mrb[28].mxu1 }
 0x66b   :  { %v1617_v6 = vrot.slane %v1534_v60, %v2551_v31  ;;  %v1536_v14 = vpop.f32.mrb[29].mxu1 }
 0x66c   :  { %v1621_v15 = vrot.slane %v1536_v14, %v2551_v31 }
 0x66d   :  { %v1622_v20 = vmul.f32 %v1617_v6, %v2646_v4  ;;  %v1624_v21 = vmul.f32 %v1617_v6, %v2649_v7  ;;  %v1626_v58 = vmul.f32 %v1617_v6, %v2659_v19  ;;  %v1628_v61 = vmul.f32 %v1617_v6, %v2667_v41 }
 0x66e   :  { %v1609_v17 = vpop.f32.mrb[30].mxu1  ;;  %v1630_v26 = vmul.f32 %v1617_v6, %v2679_v2  ;;  %v1632_v29 = vmul.f32 %v1617_v6, %v2689_v12  ;;  %v1634_v9 = vmul.f32 %v1617_v6, %v2699_v23  ;;  %v1636_v30 = vmul.f32 %v1617_v6, %v1346_v33 }
 0x66f   :  { %v1611_v24 = vpop.f32.mrb[31].mxu1  ;;  %v1623_v32 = vmul.f32 %v1621_v15, %v2637_v59  ;;  %v1625_v34 = vmul.f32 %v1621_v15, %v2640_v62  ;;  %v1627_v4 = vmul.f32 %v1621_v15, %v2643_v1  ;;  %v1641_v7 = vrot.slane %v1609_v17, %v2551_v31 }
 0x670   :  { %v1629_v19 = vmul.f32 %v1621_v15, %v2652_v10  ;;  %v1631_v41 = vmul.f32 %v1621_v15, %v2662_v22  ;;  %v1633_v35 = vmul.f32 %v1621_v15, %v2674_v44  ;;  %v1645_v2 = vrot.slane %v1611_v24, %v2551_v31 }
 0x671   :  { %v1646_v12 = vadd.f32 %v1641_v7, %v1622_v20  ;;  %v1648_v36 = vadd.f32 %v1641_v7, %v1624_v21  ;;  %v1650_v23 = vadd.f32 %v1641_v7, %v1626_v58  ;;  %v1652_v33 = vadd.f32 %v1641_v7, %v1628_v61 }
 0x672   :  { %v1654_v18 = vadd.f32 %v1641_v7, %v1630_v26  ;;  %v1656_v59 = vadd.f32 %v1641_v7, %v1632_v29  ;;  %v2742_v38 = vadd.f32 %v1641_v7, %v1634_v9  ;;  %v2744_v62 = vadd.f32 %v1641_v7, %v1636_v30 }
 0x673   :  { %v1635_v1 = vmul.f32 %v1621_v15, %v2684_v11  ;;  %v1637_v10 = vmul.f32 %v1621_v15, %v2694_v3  ;;  %vm1663_vm3 = vcmp.ge.f32.partialorder %v1646_v12, 0.0  ;;  %vm1665_vm4 = vcmp.ge.f32.partialorder %v1648_v36, 0.0 }
 0x674   :  { %vm1667_vm5 = vcmp.ge.f32.partialorder %v1650_v23, 0.0  ;;  %vm1669_vm6 = vcmp.ge.f32.partialorder %v1652_v33, 0.0  ;;  %vm1671_vm7 = vcmp.ge.f32.partialorder %v1654_v18, 0.0  ;;  %vm1673_vm8 = vcmp.ge.f32.partialorder %v1656_v59, 0.0 }
 0x675   :  { %vm1675_vm9 = vcmp.ge.f32.partialorder %v2742_v38, 0.0  ;;  %vm1677_vm10 = vcmp.ge.f32.partialorder %v2744_v62, 0.0  ;;  %v1647_v31 = vadd.f32 %v1645_v2, %v1623_v32  ;;  %v1649_v22 = vadd.f32 %v1645_v2, %v1625_v34 }
 0x676   :  { %v1651_v44 = vadd.f32 %v1645_v2, %v1627_v4  ;;  %v1653_v45 = vadd.f32 %v1645_v2, %v1629_v19  ;;  %v1655_v46 = vadd.f32 %v1645_v2, %v1631_v41  ;;  %v1657_v47 = vadd.f32 %v1645_v2, %v1633_v35 }
 0x677   :  { %v1659_v49 = vadd.f32 %v1645_v2, %v1635_v1  ;;  %v1661_v11 = vadd.f32 %v1645_v2, %v1637_v10  ;;  %vm1664_vm11 = vcmp.ge.f32.partialorder %v1647_v31, 0.0  ;;  %vm1666_vm12 = vcmp.ge.f32.partialorder %v1649_v22, 0.0 }
 0x678   :  { %vm1668_vm13 = vcmp.ge.f32.partialorder %v1651_v44, 0.0  ;;  %vm1670_vm14 = vcmp.ge.f32.partialorder %v1653_v45, 0.0  ;;  %vm1672_vm15 = vcmp.ge.f32.partialorder %v1655_v46, 0.0  ;;  %vm1674_vm0 = vcmp.ge.f32.partialorder %v1657_v47, 0.0 }
 0x679   :  { %vm1676_vm1 = vcmp.ge.f32.partialorder %v1659_v49, 0.0  ;;  %vm1678_vm2 = vcmp.ge.f32.partialorder %v1661_v11, 0.0  ;;  %v1688_v3 = vmul.f32 %v1686_v51, %v1646_v12  ;;  %v1689_v52 = vmul.f32 %v1686_v51, %v1647_v31 }
 0x67a   :  { %v1690_v37 = vmul.f32 %v1686_v51, %v1648_v36  ;;  %v1691_v27 = vmul.f32 %v1686_v51, %v1649_v22  ;;  %v1692_v55 = vmul.f32 %v1686_v51, %v1650_v23  ;;  %v1693_v57 = vmul.f32 %v1686_v51, %v1651_v44 }
 0x67b   :  { %v1694_v40 = vmul.f32 %v1686_v51, %v1652_v33  ;;  %v1695_v63 = vmul.f32 %v1686_v51, %v1653_v45  ;;  %v1696_v0 = vmul.f32 %v1686_v51, %v1654_v18  ;;  %v1697_v5 = vmul.f32 %v1686_v51, %v1655_v46 }
 0x67c   :  { %v1698_v8 = vmul.f32 %v1686_v51, %v1656_v59  ;;  %v1699_v48 = vmul.f32 %v1686_v51, %v1657_v47  ;;  %v1700_v50 = vmul.f32 %v1686_v51, %v2742_v38  ;;  %v1701_v53 = vmul.f32 %v1686_v51, %v1659_v49 }
 0x67d   :  { %v1702_v56 = vmul.f32 %v1686_v51, %v2744_v62  ;;  %v1703_v13 = vmul.f32 %v1686_v51, %v1661_v11  ;;  %v1704_v16 = vsel %vm1663_vm3, %v1646_v12, %v1688_v3  ;;  %v1705_v25 = vsel %vm1664_vm11, %v1647_v31, %v1689_v52 }
 0x67e   :  { %v1706_v28 = vsel %vm1665_vm4, %v1648_v36, %v1690_v37  ;;  %v1707_v42 = vsel %vm1666_vm12, %v1649_v22, %v1691_v27  ;;  %v1708_v43 = vsel %vm1667_vm5, %v1650_v23, %v1692_v55  ;;  %v1709_v39 = vsel %vm1668_vm13, %v1651_v44, %v1693_v57  ;;  %1720 = vst [vmem:[%s2830_s10] sm:$0xff] %v1704_v16 }
 0x67f   :  { %v1710_v54 = vsel %vm1669_vm6, %v1652_v33, %v1694_v40  ;;  %v1711_v60 = vsel %vm1670_vm14, %v1653_v45, %v1695_v63  ;;  %1721 = vst [vmem:[%s2830_s10 + $0x8] sm:$0xff] %v1705_v25  ;;  %1722 = vst [vmem:[%s2830_s10 + $0x10] sm:$0xff] %v1706_v28  ;;  %v1712_v6 = vsel %vm1671_vm7, %v1654_v18, %v1696_v0 }
 0x680   :  { %1723 = vst [vmem:[%s2830_s10 + $0x18] sm:$0xff] %v1707_v42  ;;  %v1713_v14 = vsel %vm1672_vm15, %v1655_v46, %v1697_v5  ;;  %v1714_v15 = vsel %vm1673_vm8, %v1656_v59, %v1698_v8  ;;  %v1715_v17 = vsel %vm1674_vm0, %v1657_v47, %v1699_v48  ;;  %1724 = vst [vmem:[%s2830_s10 + $0x20] sm:$0xff] %v1708_v43 }
 0x681   :  { %1725 = vst [vmem:[%s2830_s10 + $0x28] sm:$0xff] %v1709_v39  ;;  %1726 = vst [vmem:[%s2830_s10 + $0x30] sm:$0xff] %v1710_v54  ;;  %v1716_v20 = vsel %vm1675_vm9, %v2742_v38, %v1700_v50  ;;  %v1717_v21 = vsel %vm1676_vm1, %v1659_v49, %v1701_v53  ;;  %v1718_v58 = vsel %vm1677_vm10, %v2744_v62, %v1702_v56 }
 0x682   :  { %1727 = vst [vmem:[%s2830_s10 + $0x38] sm:$0xff] %v1711_v60  ;;  %v1719_v61 = vsel %vm1678_vm2, %v1661_v11, %v1703_v13  ;;  %1728 = vst [vmem:[%s2830_s10 + $0x40] sm:$0xff] %v1712_v6 }
 0x683   :  { %1729 = vst [vmem:[%s2830_s10 + $0x48] sm:$0xff] %v1713_v14  ;;  %1730 = vst [vmem:[%s2830_s10 + $0x50] sm:$0xff] %v1714_v15 }
 0x684   :  { %1731 = vst [vmem:[%s2830_s10 + $0x58] sm:$0xff] %v1715_v17  ;;  %1732 = vst [vmem:[%s2830_s10 + $0x60] sm:$0xff] %v1716_v20 }
 0x685   :  { %1733 = vst [vmem:[%s2830_s10 + $0x68] sm:$0xff] %v1717_v21  ;;  %1734 = vst [vmem:[%s2830_s10 + $0x70] sm:$0xff] %v1718_v58 }
 0x686   :  { %1735 = vst [vmem:[%s2830_s10 + $0x78] sm:$0xff] %v1719_v61 }

</bundles_post_ra>
